<compile_context>
chip_gen: v7x
topology: tpu7x:2x2x1
jax: 0.10.0
libtpu: 0.0.40
codegen_flags: <defaults>
</compile_context>

<pallas_src>
import functools

import jax
import jax.numpy as jnp
from jax.experimental import pallas as pl
from jax.experimental.pallas import tpu as pltpu


def _round_up(v, m):
    return ((v + m - 1) // m) * m


def _residual_ffn_kernel(x_ref, w1_ref, b1_ref, w2_ref, b2_ref, o_ref, *,
                         hidden_chunk, num_chunks):
    x = x_ref[...]                                   # (TM, Dp), input dtype (f32)
    x_mm = x.astype(w1_ref.dtype)                    # bf16 operand for the MXU

    tm = x.shape[0]
    dp = o_ref.shape[1]
    acc = jnp.zeros((tm, dp), jnp.float32)

    inv_sqrt2 = jnp.float32(0.7071067811865476)
    # Static loop over hidden chunks keeps the live (TM, hk) intermediate small
    # and lets the second matmul of chunk c overlap the GELU of chunk c+1.
    for c in range(num_chunks):
        lo = c * hidden_chunk
        hi = lo + hidden_chunk
        h = jnp.dot(x_mm, w1_ref[:, lo:hi],
                    preferred_element_type=jnp.float32)          # (TM, hk) f32
        h = h + b1_ref[:, lo:hi]
        # Exact (erf) GELU, matches torch.nn.GELU default.
        h = 0.5 * h * (1.0 + jax.lax.erf(h * inv_sqrt2))
        # Dropout(p=0.0) == identity.
        acc = acc + jnp.dot(h.astype(w2_ref.dtype), w2_ref[lo:hi, :],
                            preferred_element_type=jnp.float32)  # (TM, Dp) f32

    # Second bias, then the Residual skip connection, all in f32.
    y = acc + b2_ref[...] + x.astype(jnp.float32)
    o_ref[...] = y.astype(o_ref.dtype)


@functools.partial(jax.jit,
                   static_argnames=("row_tile", "hidden_chunk", "compute_dtype"))
def residual_feed_forward(x, w1, b1, w2, b2, *, row_tile=256, hidden_chunk=512,
                          compute_dtype=jnp.bfloat16):
    """Residual(FeedForward)(x).

    x: (batch, seq, dim); w1: (dim, hidden); b1: (hidden,);
    w2: (hidden, dim); b2: (dim,). Returns (batch, seq, dim) in x.dtype.
    """
    batch, seq, dim = x.shape
    hidden = w1.shape[1]
    rows = batch * seq

    assert row_tile % 8 == 0, "row_tile must be a multiple of 8 (sublane)"

    # Lane-dense padding (last dims multiples of 128) + row padding (no assert).
    dim_p = _round_up(dim, 128)
    hidden_p = _round_up(hidden, 128)
    rows_p = _round_up(rows, row_tile)

    # Hidden chunk: a multiple of 128 that divides hidden_p, capped at hidden_chunk.
    hk = max(128, (min(hidden_chunk, hidden_p) // 128) * 128)
    while hidden_p % hk:
        hk -= 128
    num_chunks = hidden_p // hk

    x2d = jnp.pad(x.reshape(rows, dim),
                  ((0, rows_p - rows), (0, dim_p - dim)))
    w1_p = jnp.pad(w1, ((0, dim_p - dim), (0, hidden_p - hidden))).astype(compute_dtype)
    w2_p = jnp.pad(w2, ((0, hidden_p - hidden), (0, dim_p - dim))).astype(compute_dtype)
    b1_p = jnp.pad(b1, (0, hidden_p - hidden)).astype(jnp.float32).reshape(1, hidden_p)
    b2_p = jnp.pad(b2, (0, dim_p - dim)).astype(jnp.float32).reshape(1, dim_p)

    grid = (rows_p // row_tile,)

    # Explicit VMEM budget: double-buffered x/out tiles + (double-buffered) weights
    # + live f32 intermediates, with ~30% headroom, clamped to the v7x 64 MiB ceiling.
    bpe = jnp.dtype(compute_dtype).itemsize
    io_bytes = row_tile * dim_p * x2d.dtype.itemsize          # one x or out tile
    w_bytes = (dim_p * hidden_p + hidden_p * dim_p) * bpe
    b_bytes = (hidden_p + dim_p) * 4
    live_bytes = row_tile * hk * 4 + row_tile * dim_p * 4     # h chunk + accumulator
    est = 2 * (2 * io_bytes) + 2 * (w_bytes + b_bytes) + live_bytes
    vmem_limit = int(min(max(est * 1.3, 32 * 1024 * 1024), 64 * 1024 * 1024))

    cost = pl.CostEstimate(
        flops=2 * 2 * rows_p * dim_p * hidden_p,              # two matmuls
        transcendentals=rows_p * hidden_p,                    # erf in GELU
        bytes_accessed=2 * io_bytes * grid[0] + w_bytes + b_bytes,
    )

    kernel = functools.partial(_residual_ffn_kernel,
                               hidden_chunk=hk, num_chunks=num_chunks)

    out2d = pl.pallas_call(
        kernel,
        out_shape=jax.ShapeDtypeStruct((rows_p, dim_p), x.dtype),
        grid_spec=pltpu.PrefetchScalarGridSpec(
            num_scalar_prefetch=0,
            grid=grid,
            in_specs=[
                pl.BlockSpec((row_tile, dim_p), lambda i: (i, 0)),   # x tile
                pl.BlockSpec((dim_p, hidden_p), lambda i: (0, 0)),   # W1 (resident)
                pl.BlockSpec((1, hidden_p), lambda i: (0, 0)),       # b1
                pl.BlockSpec((hidden_p, dim_p), lambda i: (0, 0)),   # W2 (resident)
                pl.BlockSpec((1, dim_p), lambda i: (0, 0)),          # b2
            ],
            out_specs=pl.BlockSpec((row_tile, dim_p), lambda i: (i, 0)),
        ),
        compiler_params=pltpu.CompilerParams(
            dimension_semantics=("parallel",),       # megacore sharding on v7x
            vmem_limit_bytes=vmem_limit,
        ),
        cost_estimate=cost,
    )(x2d, w1_p, b1_p, w2_p, b2_p)

    return out2d[:rows, :dim].reshape(batch, seq, dim)


def _init_params(key, dim, hidden):
    # Deterministic init mimicking nn.Linear (uniform(-1/sqrt(fan_in), ...)).
    k1, k2, k3, k4 = jax.random.split(key, 4)
    lim1 = 1.0 / (dim ** 0.5)
    lim2 = 1.0 / (hidden ** 0.5)
    w1 = jax.random.uniform(k1, (dim, hidden), jnp.float32, -lim1, lim1)
    b1 = jax.random.uniform(k2, (hidden,), jnp.float32, -lim1, lim1)
    w2 = jax.random.uniform(k3, (hidden, dim), jnp.float32, -lim2, lim2)
    b2 = jax.random.uniform(k4, (dim,), jnp.float32, -lim2, lim2)
    return w1, b1, w2, b2


if __name__ == "__main__":
    key = jax.random.PRNGKey(0)
    kx, kp = jax.random.split(key)

    batch, seq, dim, hidden = 2, 64, 32, 64
    x = jax.random.normal(kx, (batch, seq, dim), dtype=jnp.float32)
    w1, b1, w2, b2 = _init_params(kp, dim, hidden)

    out = residual_feed_forward(x, w1, b1, w2, b2)
    out = jax.block_until_ready(out)

    # Pure-JAX f32 reference of Residual(FeedForward)(x) = FFN(x) + x.
    x2 = x.reshape(-1, dim)
    h_ref = x2 @ w1 + b1
    h_ref = 0.5 * h_ref * (1.0 + jax.lax.erf(h_ref * jnp.float32(0.7071067811865476)))
    y_ref = (h_ref @ w2 + b2 + x2).reshape(batch, seq, dim)

    # bf16 matmuls with f32 accumulation vs full-f32 reference -> modest tolerance.
    max_err = float(jnp.max(jnp.abs(out - y_ref)))
    assert jnp.allclose(out, y_ref, atol=2e-2, rtol=2e-2), max_err

    print("KERNEL_OK")
</pallas_src>

<mosaic_0001>
module attributes {stable_mosaic.version = 11 : i64} {
  func.func @_residual_ffn_kernel(%arg0: i32, %arg1: memref<256x128xf32, #tpu.memory_space<vmem>>, %arg2: memref<128x128xbf16, #tpu.memory_space<vmem>>, %arg3: memref<1x128xf32, #tpu.memory_space<vmem>>, %arg4: memref<128x128xbf16, #tpu.memory_space<vmem>>, %arg5: memref<1x128xf32, #tpu.memory_space<vmem>>, %arg6: memref<256x128xf32, #tpu.memory_space<vmem>>) attributes {dimension_semantics = [#tpu.dimension_semantics<parallel>], iteration_bounds = array<i64: 1>, scalar_prefetch = 0 : i64, scratch_operands = 0 : i64, tpu.core_type = #tpu.core_type<tc>, window_params = [{transform_indices = @transform_0, window_bounds = array<i64: 256, 128>}, {pipeline_mode = #tpu.pipeline_mode<synchronous>, transform_indices = @transform_1, window_bounds = array<i64: 128, 128>}, {pipeline_mode = #tpu.pipeline_mode<synchronous>, transform_indices = @transform_2, window_bounds = array<i64: 1, 128>}, {pipeline_mode = #tpu.pipeline_mode<synchronous>, transform_indices = @transform_3, window_bounds = array<i64: 128, 128>}, {pipeline_mode = #tpu.pipeline_mode<synchronous>, transform_indices = @transform_4, window_bounds = array<i64: 1, 128>}, {transform_indices = @transform_5, window_bounds = array<i64: 256, 128>}]} {
    %c0 = arith.constant 0 : index
    %c0_0 = arith.constant 0 : index
    %0 = vector.load %arg1[%c0, %c0_0] : memref<256x128xf32, #tpu.memory_space<vmem>>, vector<256x128xf32>
    %1 = arith.truncf %0 : vector<256x128xf32> to vector<256x128xbf16>
    %cst = arith.constant 0.000000e+00 : f32
    %2 = vector.broadcast %cst : f32 to vector<256x128xf32>
    %c0_1 = arith.constant 0 : index
    %c0_2 = arith.constant 0 : index
    %3 = vector.load %arg2[%c0_1, %c0_2] : memref<128x128xbf16, #tpu.memory_space<vmem>>, vector<128x128xbf16>
    %cst_3 = arith.constant dense<0.000000e+00> : vector<256x128xf32>
    %4 = tpu.matmul %1, %3, %cst_3 {dimension_numbers = #tpu.dot_dimension_numbers<[1], [0], [0], [1], [0, 0, 1, 1], [], []>} : vector<256x128xbf16>, vector<128x128xbf16>, vector<256x128xf32> -> vector<256x128xf32>
    %c0_4 = arith.constant 0 : index
    %c0_5 = arith.constant 0 : index
    %5 = vector.load %arg3[%c0_4, %c0_5] : memref<1x128xf32, #tpu.memory_space<vmem>>, vector<1x128xf32>
    %6 = vector.broadcast %5 : vector<1x128xf32> to vector<256x128xf32>
    %7 = arith.addf %4, %6 : vector<256x128xf32>
    %cst_6 = arith.constant 5.000000e-01 : f32
    %8 = vector.broadcast %cst_6 : f32 to vector<256x128xf32>
    %9 = arith.mulf %8, %7 : vector<256x128xf32>
    %cst_7 = arith.constant 0.707106769 : f32
    %10 = vector.broadcast %cst_7 : f32 to vector<256x128xf32>
    %11 = arith.mulf %7, %10 : vector<256x128xf32>
    %12 = math.erf %11 : vector<256x128xf32>
    %cst_8 = arith.constant 1.000000e+00 : f32
    %13 = vector.broadcast %cst_8 : f32 to vector<256x128xf32>
    %14 = arith.addf %13, %12 : vector<256x128xf32>
    %15 = arith.mulf %9, %14 : vector<256x128xf32>
    %16 = arith.truncf %15 : vector<256x128xf32> to vector<256x128xbf16>
    %c0_9 = arith.constant 0 : index
    %c0_10 = arith.constant 0 : index
    %17 = vector.load %arg4[%c0_9, %c0_10] : memref<128x128xbf16, #tpu.memory_space<vmem>>, vector<128x128xbf16>
    %cst_11 = arith.constant dense<0.000000e+00> : vector<256x128xf32>
    %18 = tpu.matmul %16, %17, %cst_11 {dimension_numbers = #tpu.dot_dimension_numbers<[1], [0], [0], [1], [0, 0, 1, 1], [], []>} : vector<256x128xbf16>, vector<128x128xbf16>, vector<256x128xf32> -> vector<256x128xf32>
    %19 = arith.addf %2, %18 : vector<256x128xf32>
    %c0_12 = arith.constant 0 : index
    %c0_13 = arith.constant 0 : index
    %20 = vector.load %arg5[%c0_12, %c0_13] : memref<1x128xf32, #tpu.memory_space<vmem>>, vector<1x128xf32>
    %21 = vector.broadcast %20 : vector<1x128xf32> to vector<256x128xf32>
    %22 = arith.addf %19, %21 : vector<256x128xf32>
    %23 = arith.addf %22, %0 : vector<256x128xf32>
    %c0_14 = arith.constant 0 : index
    %c0_15 = arith.constant 0 : index
    %24 = vector.load %arg6[%c0_14, %c0_15] : memref<256x128xf32, #tpu.memory_space<vmem>>, vector<256x128xf32>
    tpu.vector_store %arg6[%c0_14, %c0_15], %23 {strides = array<i32>} : memref<256x128xf32, #tpu.memory_space<vmem>>, vector<256x128xf32>,
    return
  }
  func.func @transform_0(%arg0: i32) -> (i32, i32) {
    %c0_i32 = arith.constant 0 : i32
    %c0_i32_0 = arith.constant 0 : i32
    return %arg0, %c0_i32 : i32, i32
  }
  func.func @transform_1(%arg0: i32) -> (i32, i32) {
    %c0_i32 = arith.constant 0 : i32
    %c0_i32_0 = arith.constant 0 : i32
    %c0_i32_1 = arith.constant 0 : i32
    return %c0_i32, %c0_i32_0 : i32, i32
  }
  func.func @transform_2(%arg0: i32) -> (i32, i32) {
    %c0_i32 = arith.constant 0 : i32
    %c0_i32_0 = arith.constant 0 : i32
    %c0_i32_1 = arith.constant 0 : i32
    return %c0_i32, %c0_i32_0 : i32, i32
  }
  func.func @transform_3(%arg0: i32) -> (i32, i32) {
    %c0_i32 = arith.constant 0 : i32
    %c0_i32_0 = arith.constant 0 : i32
    %c0_i32_1 = arith.constant 0 : i32
    return %c0_i32, %c0_i32_0 : i32, i32
  }
  func.func @transform_4(%arg0: i32) -> (i32, i32) {
    %c0_i32 = arith.constant 0 : i32
    %c0_i32_0 = arith.constant 0 : i32
    %c0_i32_1 = arith.constant 0 : i32
    return %c0_i32, %c0_i32_0 : i32, i32
  }
  func.func @transform_5(%arg0: i32) -> (i32, i32) {
    %c0_i32 = arith.constant 0 : i32
    %c0_i32_0 = arith.constant 0 : i32
    return %arg0, %c0_i32 : i32, i32
  }
}

</mosaic_0001>

<bundles_post_ra>
// kernel: residual_feed_forward.1
= control target key start
LH: loop header
LB: loop body
LE: loop exit
PB: predicated region body
PF: predicated region fallthrough
CT: control target
= control target key end

     0   :  { %s1547_s1 = inlined_call_operand.vmem [shape: bf16[128,128], index: 1, kind: input, shape index: {}]   ;;  %s1548_s0 = inlined_call_operand.vmem [shape: f32[256,128], index: 0, kind: input, shape index: {}]   ;;  %s1549_s3 = inlined_call_operand.vmem [shape: bf16[128,128], index: 3, kind: input, shape index: {}]   ;;  %s1550_s2 = inlined_call_operand.vmem [shape: f32[1,128], index: 2, kind: input, shape index: {}]   ;;  %s1551_s4 = inlined_call_operand.vmem [shape: f32[1,128], index: 4, kind: input, shape index: {}]   ;;  %s1552_s5 = inlined_call_operand.vmem [shape: f32[256,128], index: 5, kind: output, shape index: {}]  }
   0x1   :  { %v939_v0 = vld [vmem:[%s1547_s1] sm:$0xff]   ;;  %v940_v1 = vld [vmem:[%s1547_s1 + $0x8] sm:$0xff]   ;;  %v941_v2 = vld [vmem:[%s1547_s1 + $0x10] sm:$0xff]  }
   0x2   :  { %843 = vmatprep.subr.bf16.mxu0 %v939_v0  ;;  %v942_v3 = vld [vmem:[%s1547_s1 + $0x18] sm:$0xff]   ;;  %v1064_v4 = vld [vmem:[%s1548_s0] sm:$0xff]  ;;  %v1069_v5 = vld [vmem:[%s1548_s0 + $0x8] sm:$0xff] }
   0x3   :  { %844 = vmatpush3.bf16.msra.mxu0 %v939_v0  ;;  %v53_v6 = vpack.c.bf16 %v1069_v5, %v1064_v4  ;;  %v943_v7 = vld [vmem:[%s1547_s1 + $0x20] sm:$0xff]   ;;  %v944_v8 = vld [vmem:[%s1547_s1 + $0x28] sm:$0xff]   ;;  %v945_v9 = vld [vmem:[%s1547_s1 + $0x30] sm:$0xff]  }
   0x4   :  { %845 = vmatprep.subr.bf16.mxu0 %v940_v1  ;;  %v947_v10 = vld [vmem:[%s1549_s3] sm:$0xff]   ;;  %v948_v11 = vld [vmem:[%s1549_s3 + $0x8] sm:$0xff]   ;;  %v946_v12 = vld [vmem:[%s1547_s1 + $0x38] sm:$0xff]  }
   0x5   :  { %859 = vmatprep.mubr.bf16.mxu0 %v53_v6  ;;  %891 = vmatprep.subr.bf16.mxu1 %v947_v10  ;;  %v1094_v13 = vld [vmem:[%s1548_s0 + $0x10] sm:$0xff]  ;;  %v1099_v14 = vld [vmem:[%s1548_s0 + $0x18] sm:$0xff]  ;;  %v1104_v15 = vld [vmem:[%s1548_s0 + $0x20] sm:$0xff] }
   0x6   :  { %892 = vmatpush3.bf16.msra.mxu1 %v947_v10  ;;  %v1109_v16 = vld [vmem:[%s1548_s0 + $0x28] sm:$0xff]  ;;  %v54_v17 = vpack.c.bf16 %v1099_v14, %v1094_v13  ;;  %v1118_v19 = vld [vmem:[%s1548_s0 + $0x30] sm:$0xff]  ;;  %v1123_v20 = vld [vmem:[%s1548_s0 + $0x38] sm:$0xff] }
   0x7   :  { %846 = vmatpush3.bf16.msra.mxu0 %v940_v1  ;;  %893 = vmatprep.subr.bf16.mxu1 %v948_v11  ;;  %v55_v18 = vpack.c.bf16 %v1109_v16, %v1104_v15  ;;  %v1128_v21 = vld [vmem:[%s1548_s0 + $0x40] sm:$0xff]  ;;  %v1133_v22 = vld [vmem:[%s1548_s0 + $0x48] sm:$0xff]  ;;  %v56_v23 = vpack.c.bf16 %v1123_v20, %v1118_v19  ;;  %v1142_v25 = vld [vmem:[%s1548_s0 + $0x50] sm:$0xff] }
   0x8   :  { %847 = vmatprep.subr.bf16.mxu0 %v941_v2  ;;  %v57_v24 = vpack.c.bf16 %v1133_v22, %v1128_v21  ;;  %v1147_v26 = vld [vmem:[%s1548_s0 + $0x58] sm:$0xff]  ;;  %v1152_v27 = vld [vmem:[%s1548_s0 + $0x60] sm:$0xff]  ;;  %v1157_v28 = vld [vmem:[%s1548_s0 + $0x68] sm:$0xff] }
   0x9   :  { %v58_v29 = vpack.c.bf16 %v1147_v26, %v1142_v25  ;;  %v59_v30 = vpack.c.bf16 %v1157_v28, %v1152_v27  ;;  %v1166_v31 = vld [vmem:[%s1548_s0 + $0x70] sm:$0xff]  ;;  %v1171_v32 = vld [vmem:[%s1548_s0 + $0x78] sm:$0xff]  ;;  %v1176_v33 = vld [vmem:[%s1548_s0 + $0x80] sm:$0xff] }
   0xa   :  { %894 = vmatpush3.bf16.msra.mxu1 %v948_v11  ;;  %v1181_v34 = vld [vmem:[%s1548_s0 + $0x88] sm:$0xff]  ;;  %v60_v35 = vpack.c.bf16 %v1171_v32, %v1166_v31  ;;  %v1190_v37 = vld [vmem:[%s1548_s0 + $0x90] sm:$0xff]  ;;  %v1195_v38 = vld [vmem:[%s1548_s0 + $0x98] sm:$0xff] }
   0xb   :  { %848 = vmatpush3.bf16.msra.mxu0 %v941_v2  ;;  %v61_v36 = vpack.c.bf16 %v1181_v34, %v1176_v33  ;;  %v1200_v39 = vld [vmem:[%s1548_s0 + $0xa0] sm:$0xff]  ;;  %v1205_v40 = vld [vmem:[%s1548_s0 + $0xa8] sm:$0xff]  ;;  %v62_v41 = vpack.c.bf16 %v1195_v38, %v1190_v37  ;;  %v1214_v43 = vld [vmem:[%s1548_s0 + $0xb0] sm:$0xff] }
   0xc   :  { %849 = vmatprep.subr.bf16.mxu0 %v942_v3  ;;  %v63_v42 = vpack.c.bf16 %v1205_v40, %v1200_v39  ;;  %v1219_v44 = vld [vmem:[%s1548_s0 + $0xb8] sm:$0xff]  ;;  %v1224_v45 = vld [vmem:[%s1548_s0 + $0xc0] sm:$0xff]  ;;  %v1229_v46 = vld [vmem:[%s1548_s0 + $0xc8] sm:$0xff] }
   0xd   :  { %v64_v47 = vpack.c.bf16 %v1219_v44, %v1214_v43  ;;  %v65_v48 = vpack.c.bf16 %v1229_v46, %v1224_v45  ;;  %v1238_v49 = vld [vmem:[%s1548_s0 + $0xd0] sm:$0xff]  ;;  %v1243_v50 = vld [vmem:[%s1548_s0 + $0xd8] sm:$0xff]  ;;  %v1248_v51 = vld [vmem:[%s1548_s0 + $0xe0] sm:$0xff] }
   0xe   :  { %v1253_v52 = vld [vmem:[%s1548_s0 + $0xe8] sm:$0xff]  ;;  %v66_v53 = vpack.c.bf16 %v1243_v50, %v1238_v49  ;;  %v1262_v55 = vld [vmem:[%s1548_s0 + $0xf0] sm:$0xff]  ;;  %v1267_v56 = vld [vmem:[%s1548_s0 + $0xf8] sm:$0xff] }
   0xf   :  { %850 = vmatpush3.bf16.msra.mxu0 %v942_v3  ;;  %1555 = vst [vmem:[#allocation2_spill] sm:$0xff] %v1253_v52  ;;  %v67_v54 = vpack.c.bf16 %v1253_v52, %v1248_v51  ;;  %1556 = vst [vmem:[#allocation3_spill] sm:$0xff] %v1267_v56  ;;  %v68_v57 = vpack.c.bf16 %v1267_v56, %v1262_v55  ;;  %v949_v58 = vld [vmem:[%s1549_s3 + $0x10] sm:$0xff]   ;;  %v950_v59 = vld [vmem:[%s1549_s3 + $0x18] sm:$0xff]  }
  0x10   :  { %851 = vmatprep.subr.bf16.mxu0 %v943_v7  ;;  %895 = vmatprep.subr.bf16.mxu1 %v949_v58  ;;  %v951_v60 = vld [vmem:[%s1549_s3 + $0x20] sm:$0xff]   ;;  %v952_v61 = vld [vmem:[%s1549_s3 + $0x28] sm:$0xff]   ;;  %v953_v62 = vld [vmem:[%s1549_s3 + $0x30] sm:$0xff]  }
  0x11   :  { %896 = vmatpush3.bf16.msra.mxu1 %v949_v58  ;;  %v954_v63 = vld [vmem:[%s1549_s3 + $0x38] sm:$0xff]   ;;  %v1292_v0 = vld [vmem:[%s1550_s2] ss:$0 sm:$0xff] }
  0x12   :  { %897 = vmatprep.subr.bf16.mxu1 %v950_v59 }
  0x13   :  { %852 = vmatpush3.bf16.msra.mxu0 %v943_v7 }
  0x14   :  { %853 = vmatprep.subr.bf16.mxu0 %v944_v8 }
  0x15   :  { %898 = vmatpush3.bf16.msra.mxu1 %v950_v59 }
  0x16   :  { %899 = vmatprep.subr.bf16.mxu1 %v951_v60 }
  0x17   :  { %854 = vmatpush3.bf16.msra.mxu0 %v944_v8 }
  0x18   :  { %855 = vmatprep.subr.bf16.mxu0 %v945_v9 }
  0x19   :  { %900 = vmatpush3.bf16.msra.mxu1 %v951_v60 }
  0x1a   :  { %901 = vmatprep.subr.bf16.mxu1 %v952_v61 }
  0x1b   :  { %856 = vmatpush3.bf16.msra.mxu0 %v945_v9 }
  0x1c   :  { %857 = vmatprep.subr.bf16.mxu0 %v946_v12 }
  0x1d   :  { %902 = vmatpush3.bf16.msra.mxu1 %v952_v61 }
  0x1e   :  { %903 = vmatprep.subr.bf16.mxu1 %v953_v62 }
  0x1f   :  { %858 = vmatpush3.bf16.msra.mxu0 %v946_v12 }
  0x21   :  { %904 = vmatpush3.bf16.msra.mxu1 %v953_v62 }
  0x22   :  { %860 = vmatmul.mubr.bf16.vlgmr.msra.gmra.mrb[0].mxu0 %v54_v17  ;;  %905 = vmatprep.subr.bf16.mxu1 %v954_v63 }
  0x23   :  { %863 = vmatprep.mubr.bf16.mxu0 %v55_v18 }
  0x25   :  { %906 = vmatpush3.bf16.msra.mxu1 %v954_v63 }
  0x2a   :  { %864 = vmatmul.mubr.bf16.gmra.mrb[4].mxu0 %v56_v23 }
  0x2b   :  { %867 = vmatprep.mubr.bf16.mxu0 %v57_v24 }
  0x32   :  { %868 = vmatmul.mubr.bf16.gmra.mrb[8].mxu0 %v58_v29 }
  0x33   :  { %871 = vmatprep.mubr.bf16.mxu0 %v59_v30 }
  0x3a   :  { %872 = vmatmul.mubr.bf16.gmra.mrb[12].mxu0 %v60_v35 }
  0x3b   :  { %875 = vmatprep.mubr.bf16.mxu0 %v61_v36 }
  0x42   :  { %876 = vmatmul.mubr.bf16.gmra.mrb[16].mxu0 %v62_v41 }
  0x43   :  { %879 = vmatprep.mubr.bf16.mxu0 %v63_v42 }
  0x4a   :  { %880 = vmatmul.mubr.bf16.gmra.mrb[20].mxu0 %v64_v47 }
  0x4b   :  { %883 = vmatprep.mubr.bf16.mxu0 %v65_v48 }
  0x52   :  { %884 = vmatmul.mubr.bf16.gmra.mrb[24].mxu0 %v66_v53 }
  0x53   :  { %887 = vmatprep.mubr.bf16.mxu0 %v67_v54 }
  0x5a   :  { %888 = vmatmul.mubr.bf16.gmra.mrb[28].mxu0 %v68_v57 }
  0xf5   :  { %v861_v1 = vpop.f32.mrb[0].mxu0 }
  0xf6   :  { %v183_v2 = vadd.f32 %v861_v1, %v1292_v0  ;;  %v174_v3 = vpop.f32.mrb[1].mxu0 }
  0xf7   :  { %v175_v6 = vadd.f32 %v1292_v0, %v174_v3  ;;  %v862_v7 = vpop.f32.mrb[2].mxu0 }
  0xf8   :  { %v335_v8 = vmul.f32 0.70710677, %v183_v2  ;;  %v186_v9 = vadd.f32 %v862_v7, %v1292_v0  ;;  %v177_v10 = vpop.f32.mrb[3].mxu0  ;;  %v303_v61 = vmul.f32 0.5, %v183_v2 }
  0xf9   :  { %v333_v11 = vmul.f32 0.70710677, %v175_v6  ;;  %v178_v12 = vadd.f32 %v1292_v0, %v177_v10 }
  0xfa   :  { %955 = verf.f32 %v335_v8  ;;  %v336_v17 = vmul.f32 0.70710677, %v186_v9  ;;  %v304_v7 = vmul.f32 0.5, %v186_v9 }
  0xfb   :  { %957 = verf.f32 %v333_v11  ;;  %v334_v18 = vmul.f32 0.70710677, %v178_v12 }
  0xfc   :  { %959 = verf.f32 %v336_v17 }
  0xfd   :  { %961 = verf.f32 %v334_v18  ;;  %v865_v23 = vpop.f32.mrb[4].mxu0  ;;  %v301_v18 = vmul.f32 0.5, %v175_v6 }
  0xfe   :  { %v199_v24 = vadd.f32 %v865_v23, %v1292_v0  ;;  %v190_v29 = vpop.f32.mrb[5].mxu0 }
  0xff   :  { %v191_v30 = vadd.f32 %v1292_v0, %v190_v29  ;;  %v866_v35 = vpop.f32.mrb[6].mxu0 }
 0x100   :  { %v339_v36 = vmul.f32 0.70710677, %v199_v24  ;;  %v202_v41 = vadd.f32 %v866_v35, %v1292_v0  ;;  %v193_v42 = vpop.f32.mrb[7].mxu0 }
 0x101   :  { %v337_v47 = vmul.f32 0.70710677, %v191_v30  ;;  %v194_v48 = vadd.f32 %v1292_v0, %v193_v42  ;;  %v302_v42 = vmul.f32 0.5, %v178_v12 }
 0x102   :  { %963 = verf.f32 %v339_v36  ;;  %v340_v53 = vmul.f32 0.70710677, %v202_v41 }
 0x103   :  { %965 = verf.f32 %v337_v47  ;;  %v338_v54 = vmul.f32 0.70710677, %v194_v48 }
 0x104   :  { %v956_v57 = vpop.eup %955  ;;  %967 = verf.f32 %v340_v53 }
 0x105   :  { %v958_v58 = vpop.eup %957  ;;  %969 = verf.f32 %v338_v54  ;;  %v869_v59 = vpop.f32.mrb[8].mxu0  ;;  %v399_v62 = vadd.f32 1.0, %v956_v57 }
 0x106   :  { %v960_v60 = vpop.eup %959  ;;  %v1303_v63 = vadd.f32 %v869_v59, %v1292_v0  ;;  %v206_v1 = vpop.f32.mrb[9].mxu0  ;;  %v397_v17 = vadd.f32 1.0, %v958_v58 }
 0x107   :  { %v962_v3 = vpop.eup %961  ;;  %v400_v8 = vadd.f32 1.0, %v960_v60  ;;  %v1306_v10 = vadd.f32 %v1292_v0, %v206_v1  ;;  %v870_v11 = vpop.f32.mrb[10].mxu0  ;;  %v431_v53 = vmul.f32 %v399_v62, %v303_v61 }
 0x108   :  { %v343_v23 = vmul.f32 0.70710677, %v1303_v63  ;;  %v1310_v29 = vadd.f32 %v870_v11, %v1292_v0  ;;  %v209_v2 = vpop.f32.mrb[11].mxu0  ;;  %v398_v35 = vadd.f32 1.0, %v962_v3  ;;  %v429_v57 = vmul.f32 %v397_v17, %v301_v18 }
 0x109   :  { %v432_v36 = vmul.f32 %v400_v8, %v304_v7  ;;  %v341_v47 = vmul.f32 0.70710677, %v1306_v10  ;;  %v1314_v9 = vadd.f32 %v1292_v0, %v209_v2  ;;  %v307_v2 = vmul.f32 0.5, %v199_v24 }
 0x10a   :  { %971 = verf.f32 %v343_v23  ;;  %v344_v54 = vmul.f32 0.70710677, %v1310_v29  ;;  %v430_v58 = vmul.f32 %v398_v35, %v302_v42  ;;  %v305_v35 = vmul.f32 0.5, %v191_v30 }
 0x10b   :  { %973 = verf.f32 %v341_v47  ;;  %v342_v6 = vmul.f32 0.70710677, %v1314_v9  ;;  %v462_v60 = vpack.c.bf16 %v432_v36, %v431_v53  ;;  %v308_v47 = vmul.f32 0.5, %v202_v41 }
 0x10c   :  { %v964_v59 = vpop.eup %963  ;;  %975 = verf.f32 %v344_v54  ;;  %v461_v7 = vpack.c.bf16 %v430_v58, %v429_v57  ;;  %v306_v36 = vmul.f32 0.5, %v194_v48 }
 0x10d   :  { %v966_v1 = vpop.eup %965  ;;  %v403_v3 = vadd.f32 1.0, %v964_v59  ;;  %977 = verf.f32 %v342_v6  ;;  %v873_v12 = vpop.f32.mrb[12].mxu0 }
 0x10e   :  { %v968_v8 = vpop.eup %967  ;;  %v401_v11 = vadd.f32 1.0, %v966_v1  ;;  %v1319_v61 = vadd.f32 %v873_v12, %v1292_v0  ;;  %v222_v62 = vpop.f32.mrb[13].mxu0  ;;  %907 = vmatprep.mubr.bf16.mxu1 %v461_v7 }
 0x10f   :  { %v970_v23 = vpop.eup %969  ;;  %v404_v52 = vadd.f32 1.0, %v968_v8  ;;  %v1322_v17 = vadd.f32 %v1292_v0, %v222_v62  ;;  %v874_v18 = vpop.f32.mrb[14].mxu0  ;;  %908 = vmatmul.mubr.bf16.vlgmr.msra.gmra.mrb[0].mxu1 %v462_v60  ;;  %v435_v6 = vmul.f32 %v403_v3, %v307_v2 }
 0x110   :  { %v402_v42 = vadd.f32 1.0, %v970_v23  ;;  %v347_v53 = vmul.f32 0.70710677, %v1319_v61  ;;  %v225_v54 = vpop.f32.mrb[15].mxu0  ;;  %v234_v24 = vadd.f32 %v874_v18, %v1292_v0  ;;  %v433_v41 = vmul.f32 %v401_v11, %v305_v35 }
 0x111   :  { %v436_v57 = vmul.f32 %v404_v52, %v308_v47  ;;  %v345_v58 = vmul.f32 0.70710677, %v1322_v17  ;;  %v226_v1 = vadd.f32 %v1292_v0, %v225_v54  ;;  %v311_v18 = vmul.f32 0.5, %v1303_v63 }
 0x112   :  { %v434_v59 = vmul.f32 %v402_v42, %v306_v36  ;;  %979 = verf.f32 %v347_v53  ;;  %v348_v12 = vmul.f32 0.70710677, %v234_v24  ;;  %v312_v35 = vmul.f32 0.5, %v1310_v29 }
 0x113   :  { %981 = verf.f32 %v345_v58  ;;  %v464_v30 = vpack.c.bf16 %v436_v57, %v435_v6  ;;  %v346_v7 = vmul.f32 0.70710677, %v226_v1  ;;  %v309_v54 = vmul.f32 0.5, %v1306_v10 }
 0x114   :  { %v972_v48 = vpop.eup %971  ;;  %v463_v8 = vpack.c.bf16 %v434_v59, %v433_v41  ;;  %983 = verf.f32 %v348_v12  ;;  %v310_v6 = vmul.f32 0.5, %v1314_v9 }
 0x115   :  { %v974_v62 = vpop.eup %973  ;;  %v407_v60 = vadd.f32 1.0, %v972_v48  ;;  %v877_v3 = vpop.f32.mrb[16].mxu0  ;;  %985 = verf.f32 %v346_v7 }
 0x116   :  { %v976_v52 = vpop.eup %975  ;;  %v405_v23 = vadd.f32 1.0, %v974_v62  ;;  %v1329_v2 = vadd.f32 %v877_v3, %v1292_v0  ;;  %v238_v11 = vpop.f32.mrb[17].mxu0  ;;  %911 = vmatprep.mubr.bf16.mxu1 %v463_v8 }
 0x117   :  { %v978_v47 = vpop.eup %977  ;;  %v408_v36 = vadd.f32 1.0, %v976_v52  ;;  %v1334_v42 = vadd.f32 %v1292_v0, %v238_v11  ;;  %v878_v53 = vpop.f32.mrb[18].mxu0  ;;  %912 = vmatmul.mubr.bf16.gmra.mrb[4].mxu1 %v464_v30  ;;  %v439_v59 = vmul.f32 %v407_v60, %v311_v18 }
 0x118   :  { %v406_v57 = vadd.f32 1.0, %v978_v47  ;;  %v351_v58 = vmul.f32 0.70710677, %v1329_v2  ;;  %v241_v41 = vpop.f32.mrb[19].mxu0  ;;  %v250_v29 = vadd.f32 %v878_v53, %v1292_v0  ;;  %v437_v48 = vmul.f32 %v405_v23, %v309_v54 }
 0x119   :  { %v440_v12 = vmul.f32 %v408_v36, %v312_v35  ;;  %v349_v63 = vmul.f32 0.70710677, %v1334_v42  ;;  %v242_v8 = vadd.f32 %v1292_v0, %v241_v41  ;;  %v315_v35 = vmul.f32 0.5, %v1319_v61 }
 0x11a   :  { %v438_v7 = vmul.f32 %v406_v57, %v310_v6  ;;  %987 = verf.f32 %v351_v58  ;;  %v352_v10 = vmul.f32 0.70710677, %v250_v29  ;;  %v313_v57 = vmul.f32 0.5, %v1322_v17 }
 0x11b   :  { %989 = verf.f32 %v349_v63  ;;  %v466_v62 = vpack.c.bf16 %v440_v12, %v439_v59  ;;  %v350_v3 = vmul.f32 0.70710677, %v242_v8  ;;  %v316_v58 = vmul.f32 0.5, %v234_v24 }
 0x11c   :  { %v980_v9 = vpop.eup %979  ;;  %v465_v52 = vpack.c.bf16 %v438_v7, %v437_v48  ;;  %991 = verf.f32 %v352_v10  ;;  %v314_v63 = vmul.f32 0.5, %v226_v1 }
 0x11d   :  { %v982_v11 = vpop.eup %981  ;;  %v881_v30 = vpop.f32.mrb[20].mxu0  ;;  %v411_v60 = vadd.f32 1.0, %v980_v9  ;;  %993 = verf.f32 %v350_v3 }
 0x11e   :  { %v1343_v47 = vadd.f32 %v881_v30, %v1292_v0  ;;  %v254_v18 = vpop.f32.mrb[21].mxu0  ;;  %915 = vmatprep.mubr.bf16.mxu1 %v465_v52  ;;  %v984_v23 = vpop.eup %983  ;;  %v409_v36 = vadd.f32 1.0, %v982_v11 }
 0x11f   :  { %v1347_v53 = vadd.f32 %v1292_v0, %v254_v18  ;;  %v882_v54 = vpop.f32.mrb[22].mxu0  ;;  %v986_v6 = vpop.eup %985  ;;  %v412_v41 = vadd.f32 1.0, %v984_v23  ;;  %916 = vmatmul.mubr.bf16.gmra.mrb[8].mxu1 %v466_v62  ;;  %v443_v10 = vmul.f32 %v411_v60, %v315_v35 }
 0x120   :  { %v355_v59 = vmul.f32 0.70710677, %v1343_v47  ;;  %v257_v12 = vpop.f32.mrb[23].mxu0  ;;  %v410_v48 = vadd.f32 1.0, %v986_v6  ;;  %v1353_v61 = vadd.f32 %v882_v54, %v1292_v0  ;;  %v441_v17 = vmul.f32 %v409_v36, %v313_v57 }
 0x121   :  { %v353_v7 = vmul.f32 0.70710677, %v1347_v53  ;;  %v444_v9 = vmul.f32 %v412_v41, %v316_v58  ;;  %v1356_v3 = vadd.f32 %v1292_v0, %v257_v12  ;;  %v319_v36 = vmul.f32 0.5, %v1329_v2 }
 0x122   :  { %995 = verf.f32 %v355_v59  ;;  %v442_v24 = vmul.f32 %v410_v48, %v314_v63  ;;  %v356_v52 = vmul.f32 0.70710677, %v1353_v61  ;;  %v317_v12 = vmul.f32 0.5, %v1334_v42 }
 0x123   :  { %997 = verf.f32 %v353_v7  ;;  %v354_v1 = vmul.f32 0.70710677, %v1356_v3  ;;  %v468_v11 = vpack.c.bf16 %v444_v9, %v443_v10  ;;  %v320_v63 = vmul.f32 0.5, %v250_v29 }
 0x124   :  { %v988_v62 = vpop.eup %987  ;;  %999 = verf.f32 %v356_v52  ;;  %v467_v23 = vpack.c.bf16 %v442_v24, %v441_v17  ;;  %v318_v9 = vmul.f32 0.5, %v242_v8 }
 0x125   :  { %v990_v30 = vpop.eup %989  ;;  %v885_v18 = vpop.f32.mrb[24].mxu0  ;;  %v415_v54 = vadd.f32 1.0, %v988_v62  ;;  %1001 = verf.f32 %v354_v1 }
 0x126   :  { %v1361_v60 = vadd.f32 %v885_v18, %v1292_v0  ;;  %v270_v35 = vpop.f32.mrb[25].mxu0  ;;  %v992_v6 = vpop.eup %991  ;;  %v413_v57 = vadd.f32 1.0, %v990_v30  ;;  %919 = vmatprep.mubr.bf16.mxu1 %v467_v23 }
 0x127   :  { %v1365_v58 = vadd.f32 %v1292_v0, %v270_v35  ;;  %v886_v41 = vpop.f32.mrb[26].mxu0  ;;  %v994_v59 = vpop.eup %993  ;;  %v416_v48 = vadd.f32 1.0, %v992_v6  ;;  %920 = vmatmul.mubr.bf16.gmra.mrb[12].mxu1 %v468_v11  ;;  %v447_v52 = vmul.f32 %v415_v54, %v319_v36 }
 0x128   :  { %v359_v7 = vmul.f32 0.70710677, %v1361_v60  ;;  %v273_v10 = vpop.f32.mrb[27].mxu0  ;;  %v414_v17 = vadd.f32 1.0, %v994_v59  ;;  %v282_v2 = vadd.f32 %v886_v41, %v1292_v0  ;;  %v445_v30 = vmul.f32 %v413_v57, %v317_v12 }
 0x129   :  { %v357_v24 = vmul.f32 0.70710677, %v1365_v58  ;;  %v448_v62 = vmul.f32 %v416_v48, %v320_v63  ;;  %v274_v1 = vadd.f32 %v1292_v0, %v273_v10  ;;  %v323_v63 = vmul.f32 0.5, %v1343_v47 }
 0x12a   :  { %1003 = verf.f32 %v359_v7  ;;  %v446_v18 = vmul.f32 %v414_v17, %v318_v9  ;;  %v360_v42 = vmul.f32 0.70710677, %v282_v2  ;;  %v321_v10 = vmul.f32 0.5, %v1347_v53 }
 0x12b   :  { %1005 = verf.f32 %v357_v24  ;;  %v358_v23 = vmul.f32 0.70710677, %v274_v1  ;;  %v470_v35 = vpack.c.bf16 %v448_v62, %v447_v52  ;;  %v324_v9 = vmul.f32 0.5, %v1353_v61 }
 0x12c   :  { %v996_v29 = vpop.eup %995  ;;  %1007 = verf.f32 %v360_v42  ;;  %v469_v6 = vpack.c.bf16 %v446_v18, %v445_v30  ;;  %v322_v62 = vmul.f32 0.5, %v1356_v3 }
 0x12d   :  { %v998_v11 = vpop.eup %997  ;;  %v889_v8 = vpop.f32.mrb[28].mxu0  ;;  %v419_v59 = vadd.f32 1.0, %v996_v29  ;;  %1009 = verf.f32 %v358_v23 }
 0x12e   :  { %v295_v41 = vadd.f32 %v889_v8, %v1292_v0  ;;  %v286_v54 = vpop.f32.mrb[29].mxu0  ;;  %v1000_v36 = vpop.eup %999  ;;  %v417_v48 = vadd.f32 1.0, %v998_v11  ;;  %923 = vmatprep.mubr.bf16.mxu1 %v469_v6 }
 0x12f   :  { %v287_v57 = vadd.f32 %v1292_v0, %v286_v54  ;;  %v890_v12 = vpop.f32.mrb[30].mxu0  ;;  %v1002_v7 = vpop.eup %1001  ;;  %v420_v17 = vadd.f32 1.0, %v1000_v36  ;;  %924 = vmatmul.mubr.bf16.gmra.mrb[16].mxu1 %v470_v35  ;;  %v451_v42 = vmul.f32 %v419_v59, %v323_v63  ;;  %v327_v63 = vmul.f32 0.5, %v1361_v60 }
 0x130   :  { %v363_v24 = vmul.f32 0.70710677, %v295_v41  ;;  %v289_v52 = vpop.f32.mrb[31].mxu0  ;;  %v418_v30 = vadd.f32 1.0, %v1002_v7  ;;  %v298_v47 = vadd.f32 %v890_v12, %v1292_v0  ;;  %v449_v11 = vmul.f32 %v417_v48, %v321_v10 }
 0x131   :  { %v361_v18 = vmul.f32 0.70710677, %v287_v57  ;;  %v452_v29 = vmul.f32 %v420_v17, %v324_v9  ;;  %v290_v23 = vadd.f32 %v1292_v0, %v289_v52  ;;  %v328_v12 = vmul.f32 0.5, %v282_v2 }
 0x132   :  { %1011 = verf.f32 %v363_v24  ;;  %v450_v8 = vmul.f32 %v418_v30, %v322_v62  ;;  %v364_v53 = vmul.f32 0.70710677, %v298_v47  ;;  %v325_v48 = vmul.f32 0.5, %v1365_v58 }
 0x133   :  { %1013 = verf.f32 %v361_v18  ;;  %v362_v6 = vmul.f32 0.70710677, %v290_v23  ;;  %v472_v54 = vpack.c.bf16 %v452_v29, %v451_v42  ;;  %v326_v10 = vmul.f32 0.5, %v274_v1 }
 0x134   :  { %v1004_v61 = vpop.eup %1003  ;;  %1015 = verf.f32 %v364_v53  ;;  %v471_v36 = vpack.c.bf16 %v450_v8, %v449_v11  ;;  %v331_v2 = vmul.f32 0.5, %v295_v41  ;;  %v329_v58 = vmul.f32 0.5, %v287_v57 }
 0x135   :  { %v1006_v35 = vpop.eup %1005  ;;  %v423_v3 = vadd.f32 1.0, %v1004_v61  ;;  %1017 = verf.f32 %v362_v6  ;;  %v332_v61 = vmul.f32 0.5, %v298_v47  ;;  %v330_v1 = vmul.f32 0.5, %v290_v23 }
 0x136   :  { %v1008_v7 = vpop.eup %1007  ;;  %v421_v56 = vadd.f32 1.0, %v1006_v35  ;;  %927 = vmatprep.mubr.bf16.mxu1 %v471_v36 }
 0x137   :  { %v1010_v59 = vpop.eup %1009  ;;  %v424_v0 = vadd.f32 1.0, %v1008_v7  ;;  %928 = vmatmul.mubr.bf16.gmra.mrb[20].mxu1 %v472_v54  ;;  %v455_v17 = vmul.f32 %v423_v3, %v327_v63  ;;  %v1385_v63 = vld [vmem:[%s1551_s4] ss:$0 sm:$0xff] }
 0x138   :  { %v422_v9 = vadd.f32 1.0, %v1010_v59  ;;  %v453_v52 = vmul.f32 %v421_v56, %v325_v48 }
 0x139   :  { %v456_v24 = vmul.f32 %v424_v0, %v328_v12 }
 0x13a   :  { %v454_v62 = vmul.f32 %v422_v9, %v326_v10 }
 0x13b   :  { %v474_v18 = vpack.c.bf16 %v456_v24, %v455_v17 }
 0x13c   :  { %v1012_v30 = vpop.eup %1011  ;;  %v473_v29 = vpack.c.bf16 %v454_v62, %v453_v52 }
 0x13d   :  { %v1014_v42 = vpop.eup %1013  ;;  %v427_v11 = vadd.f32 1.0, %v1012_v30 }
 0x13e   :  { %v1016_v8 = vpop.eup %1015  ;;  %v425_v53 = vadd.f32 1.0, %v1014_v42  ;;  %931 = vmatprep.mubr.bf16.mxu1 %v473_v29 }
 0x13f   :  { %v1018_v60 = vpop.eup %1017  ;;  %v428_v6 = vadd.f32 1.0, %v1016_v8  ;;  %932 = vmatmul.mubr.bf16.gmra.mrb[24].mxu1 %v474_v18  ;;  %v459_v35 = vmul.f32 %v427_v11, %v331_v2 }
 0x140   :  { %v426_v54 = vadd.f32 1.0, %v1018_v60  ;;  %v457_v56 = vmul.f32 %v425_v53, %v329_v58 }
 0x141   :  { %v460_v36 = vmul.f32 %v428_v6, %v332_v61 }
 0x142   :  { %v458_v3 = vmul.f32 %v426_v54, %v330_v1 }
 0x143   :  { %v476_v7 = vpack.c.bf16 %v460_v36, %v459_v35 }
 0x144   :  { %v475_v59 = vpack.c.bf16 %v458_v3, %v457_v56 }
 0x146   :  { %935 = vmatprep.mubr.bf16.mxu1 %v475_v59 }
 0x147   :  { %936 = vmatmul.mubr.bf16.gmra.mrb[28].mxu1 %v476_v7 }
 0x1e2   :  { %v909_v41 = vpop.f32.mrb[0].mxu1 }
 0x1e3   :  { %v591_v47 = vadd.f32 %v909_v41, %v1385_v63  ;;  %v582_v12 = vpop.f32.mrb[1].mxu1 }
 0x1e4   :  { %v583_v57 = vadd.f32 %v1385_v63, %v582_v12  ;;  %v910_v23 = vpop.f32.mrb[2].mxu1 }
 0x1e5   :  { %v711_v0 = vadd.f32 %v591_v47, %v1094_v13  ;;  %v594_v48 = vadd.f32 %v910_v23, %v1385_v63  ;;  %v585_v10 = vpop.f32.mrb[3].mxu1 }
 0x1e6   :  { %v709_v9 = vadd.f32 %v583_v57, %v1064_v4  ;;  %v586_v17 = vadd.f32 %v1385_v63, %v585_v10 }
 0x1e7   :  { %743 = vst [vmem:[%s1552_s5 + $0x10] sm:$0xff] %v711_v0  ;;  %v712_v24 = vadd.f32 %v594_v48, %v1099_v14 }
 0x1e8   :  { %741 = vst [vmem:[%s1552_s5] sm:$0xff] %v709_v9  ;;  %v710_v52 = vadd.f32 %v586_v17, %v1069_v5 }
 0x1e9   :  { %744 = vst [vmem:[%s1552_s5 + $0x18] sm:$0xff] %v712_v24 }
 0x1ea   :  { %742 = vst [vmem:[%s1552_s5 + $0x8] sm:$0xff] %v710_v52  ;;  %v913_v4 = vpop.f32.mrb[4].mxu1 }
 0x1eb   :  { %v607_v13 = vadd.f32 %v913_v4, %v1385_v63  ;;  %v598_v62 = vpop.f32.mrb[5].mxu1 }
 0x1ec   :  { %v599_v14 = vadd.f32 %v1385_v63, %v598_v62  ;;  %v914_v30 = vpop.f32.mrb[6].mxu1 }
 0x1ed   :  { %v715_v18 = vadd.f32 %v607_v13, %v1118_v19  ;;  %v610_v42 = vadd.f32 %v914_v30, %v1385_v63  ;;  %v601_v5 = vpop.f32.mrb[7].mxu1 }
 0x1ee   :  { %v713_v29 = vadd.f32 %v599_v14, %v1104_v15  ;;  %v602_v11 = vadd.f32 %v1385_v63, %v601_v5 }
 0x1ef   :  { %747 = vst [vmem:[%s1552_s5 + $0x30] sm:$0xff] %v715_v18  ;;  %v716_v8 = vadd.f32 %v610_v42, %v1123_v20 }
 0x1f0   :  { %745 = vst [vmem:[%s1552_s5 + $0x20] sm:$0xff] %v713_v29  ;;  %v714_v53 = vadd.f32 %v602_v11, %v1109_v16 }
 0x1f1   :  { %748 = vst [vmem:[%s1552_s5 + $0x38] sm:$0xff] %v716_v8 }
 0x1f2   :  { %746 = vst [vmem:[%s1552_s5 + $0x28] sm:$0xff] %v714_v53  ;;  %v917_v15 = vpop.f32.mrb[8].mxu1 }
 0x1f3   :  { %v623_v19 = vadd.f32 %v917_v15, %v1385_v63  ;;  %v614_v60 = vpop.f32.mrb[9].mxu1 }
 0x1f4   :  { %v615_v20 = vadd.f32 %v1385_v63, %v614_v60  ;;  %v918_v2 = vpop.f32.mrb[10].mxu1 }
 0x1f5   :  { %v719_v61 = vadd.f32 %v623_v19, %v1142_v25  ;;  %v626_v6 = vadd.f32 %v918_v2, %v1385_v63  ;;  %v617_v16 = vpop.f32.mrb[11].mxu1 }
 0x1f6   :  { %v717_v58 = vadd.f32 %v615_v20, %v1128_v21  ;;  %v618_v1 = vadd.f32 %v1385_v63, %v617_v16 }
 0x1f7   :  { %751 = vst [vmem:[%s1552_s5 + $0x50] sm:$0xff] %v719_v61  ;;  %v720_v54 = vadd.f32 %v626_v6, %v1147_v26 }
 0x1f8   :  { %749 = vst [vmem:[%s1552_s5 + $0x40] sm:$0xff] %v717_v58  ;;  %v718_v35 = vadd.f32 %v618_v1, %v1133_v22  ;;  %v1557_v1 = vld [vmem:[#allocation3_spill] sm:$0xff] }
 0x1f9   :  { %752 = vst [vmem:[%s1552_s5 + $0x58] sm:$0xff] %v720_v54 }
 0x1fa   :  { %750 = vst [vmem:[%s1552_s5 + $0x48] sm:$0xff] %v718_v35  ;;  %v921_v21 = vpop.f32.mrb[12].mxu1  ;;  %v1558_v35 = vld [vmem:[#allocation2_spill] sm:$0xff] }
 0x1fb   :  { %v639_v25 = vadd.f32 %v921_v21, %v1385_v63  ;;  %v630_v36 = vpop.f32.mrb[13].mxu1 }
 0x1fc   :  { %v631_v26 = vadd.f32 %v1385_v63, %v630_v36  ;;  %v922_v56 = vpop.f32.mrb[14].mxu1 }
 0x1fd   :  { %v723_v3 = vadd.f32 %v639_v25, %v1166_v31  ;;  %v642_v7 = vadd.f32 %v922_v56, %v1385_v63  ;;  %v633_v22 = vpop.f32.mrb[15].mxu1 }
 0x1fe   :  { %v721_v59 = vadd.f32 %v631_v26, %v1152_v27  ;;  %v634_v41 = vadd.f32 %v1385_v63, %v633_v22 }
 0x1ff   :  { %755 = vst [vmem:[%s1552_s5 + $0x70] sm:$0xff] %v723_v3  ;;  %v724_v47 = vadd.f32 %v642_v7, %v1171_v32 }
 0x200   :  { %753 = vst [vmem:[%s1552_s5 + $0x60] sm:$0xff] %v721_v59  ;;  %v722_v12 = vadd.f32 %v634_v41, %v1157_v28 }
 0x201   :  { %756 = vst [vmem:[%s1552_s5 + $0x78] sm:$0xff] %v724_v47 }
 0x202   :  { %754 = vst [vmem:[%s1552_s5 + $0x68] sm:$0xff] %v722_v12  ;;  %v925_v27 = vpop.f32.mrb[16].mxu1 }
 0x203   :  { %v655_v31 = vadd.f32 %v925_v27, %v1385_v63  ;;  %v646_v57 = vpop.f32.mrb[17].mxu1 }
 0x204   :  { %v647_v32 = vadd.f32 %v1385_v63, %v646_v57  ;;  %v926_v23 = vpop.f32.mrb[18].mxu1 }
 0x205   :  { %v727_v0 = vadd.f32 %v655_v31, %v1190_v37  ;;  %v658_v48 = vadd.f32 %v926_v23, %v1385_v63  ;;  %v649_v28 = vpop.f32.mrb[19].mxu1 }
 0x206   :  { %v725_v10 = vadd.f32 %v647_v32, %v1176_v33  ;;  %v650_v9 = vadd.f32 %v1385_v63, %v649_v28 }
 0x207   :  { %759 = vst [vmem:[%s1552_s5 + $0x90] sm:$0xff] %v727_v0  ;;  %v728_v17 = vadd.f32 %v658_v48, %v1195_v38 }
 0x208   :  { %757 = vst [vmem:[%s1552_s5 + $0x80] sm:$0xff] %v725_v10  ;;  %v726_v24 = vadd.f32 %v650_v9, %v1181_v34 }
 0x209   :  { %760 = vst [vmem:[%s1552_s5 + $0x98] sm:$0xff] %v728_v17 }
 0x20a   :  { %758 = vst [vmem:[%s1552_s5 + $0x88] sm:$0xff] %v726_v24  ;;  %v929_v33 = vpop.f32.mrb[20].mxu1 }
 0x20b   :  { %v671_v37 = vadd.f32 %v929_v33, %v1385_v63  ;;  %v662_v52 = vpop.f32.mrb[21].mxu1 }
 0x20c   :  { %v663_v38 = vadd.f32 %v1385_v63, %v662_v52  ;;  %v930_v4 = vpop.f32.mrb[22].mxu1 }
 0x20d   :  { %v731_v13 = vadd.f32 %v671_v37, %v1214_v43  ;;  %v674_v62 = vadd.f32 %v930_v4, %v1385_v63  ;;  %v665_v34 = vpop.f32.mrb[23].mxu1 }
 0x20e   :  { %v729_v14 = vadd.f32 %v663_v38, %v1200_v39  ;;  %v666_v30 = vadd.f32 %v1385_v63, %v665_v34 }
 0x20f   :  { %763 = vst [vmem:[%s1552_s5 + $0xb0] sm:$0xff] %v731_v13  ;;  %v732_v18 = vadd.f32 %v674_v62, %v1219_v44 }
 0x210   :  { %761 = vst [vmem:[%s1552_s5 + $0xa0] sm:$0xff] %v729_v14  ;;  %v730_v42 = vadd.f32 %v666_v30, %v1205_v40 }
 0x211   :  { %764 = vst [vmem:[%s1552_s5 + $0xb8] sm:$0xff] %v732_v18 }
 0x212   :  { %762 = vst [vmem:[%s1552_s5 + $0xa8] sm:$0xff] %v730_v42  ;;  %v933_v39 = vpop.f32.mrb[24].mxu1 }
 0x213   :  { %v687_v43 = vadd.f32 %v933_v39, %v1385_v63  ;;  %v678_v5 = vpop.f32.mrb[25].mxu1 }
 0x214   :  { %v679_v44 = vadd.f32 %v1385_v63, %v678_v5  ;;  %v934_v29 = vpop.f32.mrb[26].mxu1 }
 0x215   :  { %v735_v11 = vadd.f32 %v687_v43, %v1238_v49  ;;  %v690_v8 = vadd.f32 %v934_v29, %v1385_v63  ;;  %v681_v40 = vpop.f32.mrb[27].mxu1 }
 0x216   :  { %v733_v53 = vadd.f32 %v679_v44, %v1224_v45  ;;  %v682_v15 = vadd.f32 %v1385_v63, %v681_v40 }
 0x217   :  { %767 = vst [vmem:[%s1552_s5 + $0xd0] sm:$0xff] %v735_v11  ;;  %v736_v19 = vadd.f32 %v690_v8, %v1243_v50 }
 0x218   :  { %765 = vst [vmem:[%s1552_s5 + $0xc0] sm:$0xff] %v733_v53  ;;  %v734_v60 = vadd.f32 %v682_v15, %v1229_v46 }
 0x219   :  { %768 = vst [vmem:[%s1552_s5 + $0xd8] sm:$0xff] %v736_v19 }
 0x21a   :  { %766 = vst [vmem:[%s1552_s5 + $0xc8] sm:$0xff] %v734_v60  ;;  %v937_v45 = vpop.f32.mrb[28].mxu1 }
 0x21b   :  { %v703_v49 = vadd.f32 %v937_v45, %v1385_v63  ;;  %v694_v20 = vpop.f32.mrb[29].mxu1 }
 0x21c   :  { %v695_v50 = vadd.f32 %v1385_v63, %v694_v20  ;;  %v938_v2 = vpop.f32.mrb[30].mxu1 }
 0x21d   :  { %v739_v61 = vadd.f32 %v703_v49, %v1262_v55  ;;  %v706_v6 = vadd.f32 %v938_v2, %v1385_v63  ;;  %v697_v46 = vpop.f32.mrb[31].mxu1 }
 0x21e   :  { %v737_v16 = vadd.f32 %v695_v50, %v1248_v51  ;;  %v698_v58 = vadd.f32 %v1385_v63, %v697_v46 }
 0x21f   :  { %771 = vst [vmem:[%s1552_s5 + $0xf0] sm:$0xff] %v739_v61  ;;  %v740_v54 = vadd.f32 %v706_v6, %v1557_v1 }
 0x220   :  { %769 = vst [vmem:[%s1552_s5 + $0xe0] sm:$0xff] %v737_v16  ;;  %v738_v21 = vadd.f32 %v698_v58, %v1558_v35 }
 0x221   :  { %772 = vst [vmem:[%s1552_s5 + $0xf8] sm:$0xff] %v740_v54 }
 0x222   :  { %770 = vst [vmem:[%s1552_s5 + $0xe8] sm:$0xff] %v738_v21 }

</bundles_post_ra>
